<compile_context>
chip_gen: v7x
topology: tpu7x:2x2x1
jax: 0.10.0
libtpu: 0.0.40
codegen_flags: <defaults>
</compile_context>

<pallas_src>
import jax
import jax.numpy as jnp
from jax.experimental import pallas as pl
from jax.experimental.pallas import tpu as pltpu

_SMALL_B_THRESHOLD = 4096    # at/below this, a single un-gridded call is cheaper
_MIN_TILE_B = 512
_MAX_TILE_B = 16384          # (5,tb)+(1,tb) dbl-buffered + f32 temps ≈ 5 MiB
_TARGET_GRID_STEPS = 8       # >= 4 steps per TensorCore on v7x for overlap/balance


def _round_up(n, m):
    return ((n + m - 1) // m) * m


def _mlp_kernel(xt_ref, w1t_ref, b1_ref, w2t_ref, b2_ref, w3t_ref, b3_ref, o_ref):
    """Fused 5->32->ReLU->16->ReLU->1->Sigmoid on one batch tile (feature-major)."""
    xt = xt_ref[...]                                                        # (5, tb)
    h1 = jnp.dot(w1t_ref[...], xt, preferred_element_type=jnp.float32) + b1_ref[...]
    h1 = jnp.maximum(h1, 0.0)                                               # (32, tb)
    h2 = jnp.dot(w2t_ref[...], h1, preferred_element_type=jnp.float32) + b2_ref[...]
    h2 = jnp.maximum(h2, 0.0)                                               # (16, tb)
    # 16 -> 1 layer on the (otherwise idle) MXU: (1,16) @ (16,tb) -> (1,tb).
    logits = (jnp.dot(w3t_ref[...], h2, preferred_element_type=jnp.float32)
              + b3_ref[...])
    # sigmoid(z) == 0.5*tanh(0.5*z) + 0.5 : one EUP push + 2 VALU ops per vreg.
    o_ref[...] = 0.5 * jnp.tanh(0.5 * logits) + 0.5                        # (1, tb)


def arithmetic_classifier(x, params):
    """Forward pass of ArithmeticClassifier via a fused Pallas kernel.

    x: (B, 5) float32
    params: dict with w1 (5,32), b1 (1,32), w2 (32,16), b2 (1,16),
            w3 (16,1), b3 (1,1), all float32.
    returns: (B, 1) float32 in (0, 1)
    """
    B = x.shape[0]

    # Tiny, one-off layout prep for the feature-major kernel.
    w1t = params["w1"].T                  # (32, 5)
    b1c = params["b1"].reshape(32, 1)     # column bias -> broadcast along lanes
    w2t = params["w2"].T                  # (16, 32)
    b2c = params["b2"].reshape(16, 1)
    w3t = params["w3"].reshape(1, 16)     # (16,1) -> (1,16) row
    b3c = params["b3"].reshape(1, 1)
    weights = (w1t, b1c, w2t, b2c, w3t, b3c)

    # ~1376 flops, 24 B of HBM and 1 transcendental per row.
    cost = pl.CostEstimate(flops=1376 * B, transcendentals=B,
                           bytes_accessed=24 * B + 4096)

    if B <= _SMALL_B_THRESHOLD:
        # Latency-dominated regime: whole problem fits trivially in VMEM; skip
        # the grid / pipelining machinery entirely.
        xt = x.T                                                  # (5, B)
        vmem = pl.BlockSpec(memory_space=pltpu.MemorySpace.VMEM)
        out = pl.pallas_call(
            _mlp_kernel,
            out_shape=jax.ShapeDtypeStruct((1, B), jnp.float32),
            in_specs=[vmem] * 7,
            out_specs=vmem,
            cost_estimate=cost,
        )(xt, *weights)
        return out.reshape(B, 1)

    # Large batch: tile the lane (batch) axis; weights stay VMEM-resident.
    tile_b = _round_up(pl.cdiv(B, _TARGET_GRID_STEPS), _MIN_TILE_B)
    tile_b = max(_MIN_TILE_B, min(_MAX_TILE_B, tile_b))
    b_pad = _round_up(B, tile_b)
    grid = (b_pad // tile_b,)

    # Pad + transpose in the wrapper: every block (input and output) is then a
    # full, lane-dense block — no masked partial writeback to reason about.
    xt = jnp.pad(x, ((0, b_pad - B), (0, 0))).T                   # (5, b_pad)

    def resident(shape):
        # Full-array block, constant block index -> fetched once, VMEM-resident.
        return pl.BlockSpec(shape, lambda i: (0, 0))

    out = pl.pallas_call(
        _mlp_kernel,
        out_shape=jax.ShapeDtypeStruct((1, b_pad), jnp.float32),
        grid=grid,
        in_specs=[
            pl.BlockSpec((5, tile_b), lambda i: (0, i)),   # x^T tiled over batch
            resident((32, 5)),  resident((32, 1)),          # w1^T, b1
            resident((16, 32)), resident((16, 1)),          # w2^T, b2
            resident((1, 16)),  resident((1, 1)),           # w3^T, b3
        ],
        out_specs=pl.BlockSpec((1, tile_b), lambda i: (0, i)),
        compiler_params=pltpu.CompilerParams(
            # Batch tiles are independent -> shard grid across both TCs on v7x.
            dimension_semantics=("parallel",),
            # Lane-dense tiles keep live VMEM ~5 MiB even at tile_b=16384; 32 MiB
            # is safely inside every generation's scoped budget.
            vmem_limit_bytes=32 * 1024 * 1024,
        ),
        cost_estimate=cost,
    )(xt, *weights)

    return out[:, :B].reshape(B, 1)


def init_params(key):
    """Deterministic init matching PyTorch nn.Linear fan-in uniform init.

    PyTorch Linear stores weight as (out, in); we keep (in, out) so the math is
    y = x @ W + b, identical to the reference module.
    """
    k1, k2, k3, k4, k5, k6 = jax.random.split(key, 6)

    def uniform_init(k, shape, fan_in):
        bound = 1.0 / jnp.sqrt(fan_in)
        return jax.random.uniform(k, shape, jnp.float32, -bound, bound)

    return {
        "w1": uniform_init(k1, (5, 32), 5.0),
        "b1": uniform_init(k2, (1, 32), 5.0),
        "w2": uniform_init(k3, (32, 16), 32.0),
        "b2": uniform_init(k4, (1, 16), 32.0),
        "w3": uniform_init(k5, (16, 1), 16.0),
        "b3": uniform_init(k6, (1, 1), 16.0),
    }


def _reference(x, p):
    """Pure-JAX reference: linear -> ReLU -> linear -> ReLU -> linear -> sigmoid."""
    h1 = jnp.maximum(x @ p["w1"] + p["b1"], 0.0)
    h2 = jnp.maximum(h1 @ p["w2"] + p["b2"], 0.0)
    logits = h2 @ p["w3"] + p["b3"]
    return jax.nn.sigmoid(logits)


if __name__ == "__main__":
    key = jax.random.PRNGKey(0)
    kx, kp, kx2 = jax.random.split(key, 3)

    params = init_params(kp)

    # Small batch: exercises the un-gridded fast path.
    B = 8
    x = jax.random.normal(kx, (B, 5), dtype=jnp.float32)
    out = jax.block_until_ready(arithmetic_classifier(x, params))
    ref = _reference(x, params)
    assert out.shape == (B, 1)
    assert jnp.allclose(out, ref, atol=1e-4, rtol=1e-4)

    # Larger ragged batch: exercises the tiled / parallel path
    # (tile_b=1024, batch padded 4611 -> 5120, grid of 5 full lane-dense blocks).
    B2 = 4611
    x2 = jax.random.normal(kx2, (B2, 5), dtype=jnp.float32)
    out2 = jax.block_until_ready(arithmetic_classifier(x2, params))
    ref2 = _reference(x2, params)
    assert out2.shape == (B2, 1)
    assert jnp.allclose(out2, ref2, atol=1e-4, rtol=1e-4)

    print("KERNEL_OK")
</pallas_src>

<mosaic_0001>
module attributes {stable_mosaic.version = 11 : i64} {
  func.func @_mlp_kernel(%arg0: memref<5x8xf32, #tpu.memory_space<vmem>>, %arg1: memref<32x5xf32, #tpu.memory_space<vmem>>, %arg2: memref<32x1xf32, #tpu.memory_space<vmem>>, %arg3: memref<16x32xf32, #tpu.memory_space<vmem>>, %arg4: memref<16x1xf32, #tpu.memory_space<vmem>>, %arg5: memref<1x16xf32, #tpu.memory_space<vmem>>, %arg6: memref<1x1xf32, #tpu.memory_space<vmem>>, %arg7: memref<1x8xf32, #tpu.memory_space<vmem>>) attributes {dimension_semantics = [], scalar_prefetch = 0 : i64, scratch_operands = 0 : i64, tpu.core_type = #tpu.core_type<tc>} {
    %c0 = arith.constant 0 : index
    %c0_0 = arith.constant 0 : index
    %0 = vector.load %arg0[%c0, %c0_0] : memref<5x8xf32, #tpu.memory_space<vmem>>, vector<5x8xf32>
    %c0_1 = arith.constant 0 : index
    %c0_2 = arith.constant 0 : index
    %1 = vector.load %arg1[%c0_1, %c0_2] : memref<32x5xf32, #tpu.memory_space<vmem>>, vector<32x5xf32>
    %cst = arith.constant dense<0.000000e+00> : vector<32x8xf32>
    %2 = tpu.matmul %1, %0, %cst {dimension_numbers = #tpu.dot_dimension_numbers<[1], [0], [0], [1], [0, 0, 1, 1], [], []>} : vector<32x5xf32>, vector<5x8xf32>, vector<32x8xf32> -> vector<32x8xf32>
    %c0_3 = arith.constant 0 : index
    %c0_4 = arith.constant 0 : index
    %3 = vector.load %arg2[%c0_3, %c0_4] : memref<32x1xf32, #tpu.memory_space<vmem>>, vector<32x1xf32>
    %4 = vector.broadcast %3 : vector<32x1xf32> to vector<32x8xf32>
    %5 = arith.addf %2, %4 : vector<32x8xf32>
    %cst_5 = arith.constant 0.000000e+00 : f32
    %6 = vector.broadcast %cst_5 : f32 to vector<32x8xf32>
    %7 = arith.maximumf %5, %6 : vector<32x8xf32>
    %c0_6 = arith.constant 0 : index
    %c0_7 = arith.constant 0 : index
    %8 = vector.load %arg3[%c0_6, %c0_7] : memref<16x32xf32, #tpu.memory_space<vmem>>, vector<16x32xf32>
    %cst_8 = arith.constant dense<0.000000e+00> : vector<16x8xf32>
    %9 = tpu.matmul %8, %7, %cst_8 {dimension_numbers = #tpu.dot_dimension_numbers<[1], [0], [0], [1], [0, 0, 1, 1], [], []>} : vector<16x32xf32>, vector<32x8xf32>, vector<16x8xf32> -> vector<16x8xf32>
    %c0_9 = arith.constant 0 : index
    %c0_10 = arith.constant 0 : index
    %10 = vector.load %arg4[%c0_9, %c0_10] : memref<16x1xf32, #tpu.memory_space<vmem>>, vector<16x1xf32>
    %11 = vector.broadcast %10 : vector<16x1xf32> to vector<16x8xf32>
    %12 = arith.addf %9, %11 : vector<16x8xf32>
    %cst_11 = arith.constant 0.000000e+00 : f32
    %13 = vector.broadcast %cst_11 : f32 to vector<16x8xf32>
    %14 = arith.maximumf %12, %13 : vector<16x8xf32>
    %c0_12 = arith.constant 0 : index
    %c0_13 = arith.constant 0 : index
    %15 = vector.load %arg5[%c0_12, %c0_13] : memref<1x16xf32, #tpu.memory_space<vmem>>, vector<1x16xf32>
    %cst_14 = arith.constant dense<0.000000e+00> : vector<1x8xf32>
    %16 = tpu.matmul %15, %14, %cst_14 {dimension_numbers = #tpu.dot_dimension_numbers<[1], [0], [0], [1], [0, 0, 1, 1], [], []>} : vector<1x16xf32>, vector<16x8xf32>, vector<1x8xf32> -> vector<1x8xf32>
    %c0_15 = arith.constant 0 : index
    %c0_16 = arith.constant 0 : index
    %17 = vector.load %arg6[%c0_15, %c0_16] : memref<1x1xf32, #tpu.memory_space<vmem>>, vector<1x1xf32>
    %18 = vector.broadcast %17 : vector<1x1xf32> to vector<1x8xf32>
    %19 = arith.addf %16, %18 : vector<1x8xf32>
    %cst_17 = arith.constant 5.000000e-01 : f32
    %20 = vector.broadcast %cst_17 : f32 to vector<1x8xf32>
    %21 = arith.mulf %20, %19 : vector<1x8xf32>
    %22 = math.tanh %21 : vector<1x8xf32>
    %cst_18 = arith.constant 5.000000e-01 : f32
    %23 = vector.broadcast %cst_18 : f32 to vector<1x8xf32>
    %24 = arith.mulf %23, %22 : vector<1x8xf32>
    %cst_19 = arith.constant 5.000000e-01 : f32
    %25 = vector.broadcast %cst_19 : f32 to vector<1x8xf32>
    %26 = arith.addf %24, %25 : vector<1x8xf32>
    %c0_20 = arith.constant 0 : index
    %c0_21 = arith.constant 0 : index
    %27 = vector.load %arg7[%c0_20, %c0_21] : memref<1x8xf32, #tpu.memory_space<vmem>>, vector<1x8xf32>
    tpu.vector_store %arg7[%c0_20, %c0_21], %26 {strides = array<i32>} : memref<1x8xf32, #tpu.memory_space<vmem>>, vector<1x8xf32>,
    return
  }
}

</mosaic_0001>

<bundles_post_ra>
// kernel: tpu_custom_call.1
= control target key start
LH: loop header
LB: loop body
LE: loop exit
PB: predicated region body
PF: predicated region fallthrough
CT: control target
= control target key end

     0   :  { %s567_s0 = inlined_call_operand.vmem [shape: f32[5,8], index: 0, kind: input, shape index: {}]   ;;  %s568_s1 = inlined_call_operand.vmem [shape: f32[32,5], index: 1, kind: input, shape index: {}]   ;;  %s569_s2 = inlined_call_operand.vmem [shape: f32[32,1], index: 2, kind: input, shape index: {}]   ;;  %s570_s3 = inlined_call_operand.vmem [shape: f32[16,32], index: 3, kind: input, shape index: {}]   ;;  %s571_s4 = inlined_call_operand.vmem [shape: f32[16,1], index: 4, kind: input, shape index: {}]   ;;  %s572_s5 = inlined_call_operand.vmem [shape: f32[1,16], index: 5, kind: input, shape index: {}]   ;;  %s573_s6 = inlined_call_operand.<no memory space> [shape: f32[1,1], index: 6, kind: input, shape index: {}]   ;;  %s574_s7 = inlined_call_operand.hbm [shape: f32[1,8], index: 7, kind: output, shape index: {}]  }
   0x1   :  { %v12_v0 = vstv %s573_s6 }
   0x2   :  { %13 = vst [vmem:[#allocation2] sm:$0x1] %v12_v0 }
   0x3   :  { %v29_v1 = vld [vmem:[%s567_s0] sm:$0x1f]  ;;  %vm71_vm0 = vcmask 1044480   ;;  %vm58_vm1 = vcmask 39936   ;;  %v31_v3 = vld [vmem:[%s568_s1 + $0x8] sm:$0xff]  ;;  %v32_v4 = vld [vmem:[%s568_s1 + $0x10] sm:$0xff] }
   0x4   :  { %v30_v2 = vld [vmem:[%s568_s1] sm:$0xff]  ;;  %389 = vmatprep.subr.msk.mxu0 %vm71_vm0, %v29_v1  ;;  %v459_v6 = vmov 0   ;;  %v36_v7 = vld [vmem:[%s569_s2 + $0x10] sm:$0xff]  ;;  %v33_v8 = vld [vmem:[%s568_s1 + $0x18] sm:$0xff] }
   0x5   :  { %391 = vmatprep.mubr.msk.f32.mxu0 %vm58_vm1, %v30_v2  ;;  %v34_v5 = vld [vmem:[%s569_s2] sm:$0xff]  ;;  %390 = vmatpush3.msk.msra.mxu0 %vm71_vm0, %v29_v1  ;;  %v35_v9 = vld [vmem:[%s569_s2 + $0x8] sm:$0xff] }
   0x6   :  { %431 = vset.pattern.permute.xlu0 %v459_v6  ;;  %392 = vmatmul.mubr.msk.f32.vlgmr.msra.gmra.mrb[0].mxu0 %vm58_vm1, %v31_v3 }
   0x7   :  { %40 = vperm.xlu0 %431, %v34_v5   ;;  %394 = vmatprep.mubr.msk.f32.mxu0 %vm58_vm1, %v32_v4 }
   0x8   :  { %432 = vset.pattern.permute.xlu1 %v459_v6 }
   0x9   :  { %14 = vsyncpa [#allocation4], 0  ;;  %50 = vperm.xlu1 %432, %v36_v7   ;;  %v37_v10 = vld [vmem:[%s569_s2 + $0x18] sm:$0xff]  ;;  %v166_v11 = vld [vmem:[%s571_s4] sm:$0xff]  ;;  %vm178_vm2 = vcmask 261120   ;;  %v460_v34 = vmov 0.0|0.0   ;;  %v269_v46 = vlaneseq }
   0xa   :  { %395 = vmatmul.mubr.msk.f32.gmra.mrb[2].mxu0 %vm58_vm1, %v33_v8  ;;  %v167_v12 = vld [vmem:[%s571_s4 + $0x8] sm:$0xff]  ;;  %v263_v13 = vld [vmem:[#allocation2] sm:$0x1]  ;;  %423 = vmatprep.subr.bf16.mxu0 %v460_v34  ;;  %vm461_vm3 = vmmov 0   ;;  %v462_v35 = vmov 0.0   ;;  %vm273_vm4 = vcmask 130048  }
   0xb   :  { %45 = vperm.xlu0 %431, %v35_v9   ;;  %v164_v14 = vld [vmem:[%s570_s3] sm:$0xff]  ;;  %v165_v33 = vld [vmem:[%s570_s3 + $0x8] sm:$0xff]  ;;  %412 = vmatprep.mubr.msk.f32.mxu0 %vm461_vm3, %v462_v35  ;;  %v270_v47 = vshrl.u32 %v269_v46, 7  ;;  %s463_s3 = smov [#allocation3]   ;;  %vm351_vm5 = vcmask 57344  }
   0xc   :  { %405 = vmatprep.mubr.msk.f32.mxu1 %vm178_vm2, %v164_v14  ;;  %v262_v45 = vld [vmem:[%s572_s5] sm:$0x1]  ;;  %s359_s26 = sshll.u32 %s463_s3, 4  ;;  %s360_s26 = int_to_ptr.vmem [resolvable:$true] %s359_s26 }
   0xd   :  { %55 = vperm.xlu1 %432, %v37_v10   ;;  %v271_v48 = vsub.s32 0, %v270_v47  ;;  %s435_s5 = scalar_lea.vmem %s360_s26, 16  ;;  %s439_s27 = scalar_lea.vmem %s360_s26, 32 }
   0xe   :  { %p436_p0 = scmp.ne.s32.totalorder %s360_s26, %s435_s5  ;;  %p440_p1 = scmp.lt.s32.totalorder %s360_s26, %s360_s26 }
   0xf   :  { %170 = vperm.xlu0 %431, %v166_v11   ;;  %p441_p2 = scmp.lt.s32.totalorder %s439_s27, %s435_s5 }
  0x11   :  { %175 = vperm.xlu1 %432, %v167_v12   ;;  %p442_p3 = por %p441_p2, %p440_p1 }
  0x13   :  { %266 = vperm.xlu0 %431, %v263_v13   ;;  %p443_p4 = pnand %p442_p3, %p436_p0 }
  0x86   :  { %v41_v15 = vpop.permute.xlu0 %40 }
  0x88   :  { %v51_v16 = vpop.permute.xlu1 %50 }
  0x8a   :  { %v46_v17 = vpop.permute.xlu0 %45 }
  0x8c   :  { %v56_v23 = vpop.permute.xlu1 %55 }
  0x8e   :  { %v171_v38 = vpop.permute.xlu0 %170 }
  0x90   :  { %v176_v36 = vpop.permute.xlu1 %175 }
  0x92   :  { %v267_v49 = vpop.permute.xlu0 %266 }
  0x93   :  { %v272_v50 = vrot.slane %v267_v49, %v271_v48 }
  0xd9   :  { %v393_v18 = vpop.f32.mrb[0].mxu0 }
  0xda   :  { %v147_v19 = vadd.f32 %v393_v18, %v46_v17  ;;  %v141_v20 = vpop.f32.mrb[1].mxu0 }
  0xdb   :  { %v142_v21 = vadd.f32 %v141_v20, %v41_v15 }
  0xdc   :  { %v161_v22 = vmax.f32 %v147_v19, 0.0 }
  0xdd   :  { %v160_v24 = vmax.f32 %v142_v21, 0.0  ;;  %v396_v25 = vpop.f32.mrb[2].mxu0 }
  0xde   :  { %v157_v26 = vadd.f32 %v396_v25, %v56_v23  ;;  %v151_v27 = vpop.f32.mrb[3].mxu0 }
  0xdf   :  { %v152_v28 = vadd.f32 %v151_v27, %v51_v16  ;;  %v415_v29 = vpack.c.bf16 %v161_v22, %v160_v24 }
  0xe0   :  { %v163_v30 = vmax.f32 %v157_v26, 0.0 }
  0xe1   :  { %v162_v31 = vmax.f32 %v152_v28, 0.0  ;;  %416 = vmatprep.subr.bf16.mxu1 %v415_v29 }
  0xe2   :  { %418 = vmatpush3.bf16.msra.mxu1 %v415_v29 }
  0xe3   :  { %v419_v32 = vpack.c.bf16 %v163_v30, %v162_v31 }
  0xe5   :  { %420 = vmatprep.subr.bf16.mxu1 %v419_v32 }
  0xe6   :  { %422 = vmatpush3.bf16.msra.mxu1 %v419_v32 }
  0xe9   :  { %406 = vmatmul.mubr.msk.f32.vlgmr.msra.gmra.mrb[0].mxu1 %vm178_vm2, %v165_v33 }
 0x1bc   :  { %v407_v37 = vpop.f32.mrb[0].mxu1 }
 0x1bd   :  { %v257_v39 = vadd.f32 %v407_v37, %v176_v36  ;;  %v251_v40 = vpop.f32.mrb[1].mxu1 }
 0x1be   :  { %v252_v41 = vadd.f32 %v251_v40, %v171_v38 }
 0x1bf   :  { %v261_v42 = vmax.f32 %v257_v39, 0.0 }
 0x1c0   :  { %v260_v43 = vmax.f32 %v252_v41, 0.0 }
 0x1c2   :  { %v424_v44 = vpack.c.bf16 %v261_v42, %v260_v43 }
 0x1c4   :  { %425 = vmatpush3.bf16.msra.mxu0 %v424_v44 }
 0x1c7   :  { %413 = vmatmul.mubr.msk.f32.vlgmr.msra.gmra.mrb[4].mxu0 %vm273_vm4, %v262_v45 }
 0x29a   :  { %v343_v51 = vpop.f32.mrb[4].mxu0 }
 0x29b   :  { %v344_v52 = vadd.f32 %v343_v51, %v272_v50  ;;  %v414_v53 = vpop.f32.mrb[5].mxu0 }
 0x29d   :  { %v347_v54 = vmul.f32 0.5, %v344_v52 }
 0x29f   :  { %433 = vtanh.f32 %v347_v54 }
 0x2a9   :  { %v434_v55 = vpop.eup %433 }
 0x2aa   :  { %v349_v56 = vmul.f32 0.5, %v434_v55 }
 0x2ac   :  { %v350_v57 = vadd.f32 0.5, %v349_v56 }
 0x2ae   :  { %352 = vst.msk [vmem:[#allocation3] sm:$0x1] %vm351_vm5, %v350_v57 }
 0x2af   :  { %446 = shalt.err (!%p443_p4)
}
 0x2b0   :  { %s447_s30 = scalar_lea.hbm %s574_s7, 16 }
 0x2b1   :  { %p448_p5 = scmp.ne.s32.totalorder %s574_s7, %s447_s30  ;;  %p451_p6 = scmp.lt.u32.totalorder %s447_s30, %s574_s7 }
 0x2b3   :  { %p453_p7 = pnand %p451_p6, %p448_p5 }
 0x2b5   :  { %456 = shalt.err (!%p453_p7)
}
 0x2b6   :  { %362 = dma.vmem_to_hbm [thread:$0]  %s360_s26, 16, %s574_s7, [#allocation4]  }
 0x2b7   :  { %457 = dma.done.wait [#allocation4], 16  }
 0x2b8   :  { %458 = vsyncadd [#allocation4], 4294967280 }
 0x2b9   :  { %366 = vsyncpa [#allocation4], 1 }

</bundles_post_ra>
